<compile_context>
chip_gen: v7x
topology: tpu7x:2x2x1
jax: 0.10.0
libtpu: 0.0.40
codegen_flags: <defaults>
</compile_context>

<pallas_src>
import functools
import math

import jax
import jax.numpy as jnp
from jax.experimental import pallas as pl
from jax.experimental.pallas import tpu as pltpu


def _pinned_index_map(ndim):
    # Parameters stay VMEM-resident: same (0, ..., 0) block for every grid step.
    return lambda i: (0,) * ndim


def _residual_add_kernel(fn, n_params, x_ref, *rest):
    # rest = (*param_refs, o_ref); x_ref / o_ref are (D, TB) lane-dense tiles.
    o_ref = rest[n_params]
    param_vals = tuple(r[...] for r in rest[:n_params])

    y = fn(x_ref[...], *param_vals)                              # fn(x)
    # Re-read the residual at the store (keeps the x tile's live range short).
    o_ref[...] = (y + x_ref[...].astype(y.dtype)).astype(o_ref.dtype)


def _pick_col_tile(rows, max_cols):
    """Lane-axis tile size; never requires a wrapper-side pad copy."""
    if rows <= max_cols:
        return rows                          # single grid step, full-extent block
    t = max(128, (max_cols // 128) * 128)
    cand = t
    while cand >= 128:                       # prefer an exact lane-aligned divisor
        if rows % cand == 0:
            return cand
        cand -= 128
    return t                                 # ragged tail masked by Pallas itself


def residual_add(fn, x, params=(), *, max_block_cols=2048,
                 cost_estimate=None, vmem_limit_bytes=None):
    """Pallas ResidualAdd: returns fn(x, *params) + x, fused in one kernel.

    x is (..., D).  Leading dims are flattened into a row axis, transposed so
    rows sit on the TPU lane axis (lane-dense layout), and tiled with a 1-D
    grid.  `fn` receives a (D, TB) tile (features on sublanes, rows on lanes)
    plus the VMEM-resident `params` and must use tile-local jnp/lax ops.
    """
    orig_shape = x.shape
    d = orig_shape[-1]
    rows = 1
    for s in orig_shape[:-1]:
        rows *= s

    # Layout plumbing (done once by XLA, outside the kernel): rows -> lanes.
    xt = x.reshape(rows, d).T                # (D, rows)

    tb = _pick_col_tile(rows, max_block_cols)
    grid = (pl.cdiv(rows, tb),)

    x_spec = pl.BlockSpec((d, tb), lambda i: (0, i))
    out_spec = pl.BlockSpec((d, tb), lambda i: (0, i))
    param_specs = [pl.BlockSpec(p.shape, _pinned_index_map(p.ndim)) for p in params]

    # Auto-raise the scoped VMEM limit for very large tiles (v5e default is
    # 16 MiB); stay under v7x's 64 MiB physical VMEM.
    if vmem_limit_bytes is None:
        est = 2 * 2 * d * tb * x.dtype.itemsize                     # dbl-buffered in+out
        est += sum(int(p.size) * p.dtype.itemsize for p in params)  # resident params
        if est > 12 * 1024 * 1024:
            vmem_limit_bytes = min(4 * est, 64 * 1024 * 1024)

    kernel = functools.partial(_residual_add_kernel, fn, len(params))

    out_t = pl.pallas_call(
        kernel,
        out_shape=jax.ShapeDtypeStruct((d, rows), x.dtype),
        grid=grid,
        in_specs=[x_spec] + param_specs,
        out_specs=out_spec,
        compiler_params=pltpu.CompilerParams(
            dimension_semantics=("parallel",),
            vmem_limit_bytes=vmem_limit_bytes,
        ),
        cost_estimate=cost_estimate,
    )(xt, *params)

    return out_t.T.reshape(orig_shape)


# ----------------------------------------------------------------------------
# Demo `fn`: the pre-norm feed-forward branch that ResidualAdd wraps in the
# conformer block: LayerNorm -> Linear(D,4D) -> GELU -> Linear(4D,D), written
# for the transposed (D, TB) tile with the LN affine pre-folded into w1/b1.
# Dropout = identity (inference).
# ----------------------------------------------------------------------------
def ffn_branch_t(xt, w1t, b1t, w2t, b2t):
    # xt: (D, TB); w1t: (H, D) = (gamma*w1).T ; b1t: (H, 1) = (beta@w1 + b1).T
    # w2t: (D, H) = w2.T ; b2t: (D, 1) = b2.T
    d = xt.shape[0]
    xf = xt.astype(jnp.float32)
    # Independent feature-axis sums; var = E[x^2] - E[x]^2 (no mean->var chain).
    # TODO(synk): these sublane sums could be routed through the idle MXU
    # (ones(1, D) @ x) to take them off the XLU critical path.
    s1 = jnp.sum(xf, axis=0, keepdims=True)                  # (1, TB)
    s2 = jnp.sum(xf * xf, axis=0, keepdims=True)             # (1, TB)
    mean = s1 * (1.0 / d)
    var = s2 * (1.0 / d) - mean * mean
    xn = ((xf - mean) * jax.lax.rsqrt(var + 1e-5)).astype(w1t.dtype)
    h = jnp.dot(w1t, xn, preferred_element_type=jnp.float32) + b1t   # (H, TB)
    # tanh-approx GELU (lands on the EUP slot).  PyTorch nn.GELU default is
    # exact erf -> tiny numerical mismatch, acceptable here.
    h = jax.nn.gelu(h).astype(w2t.dtype)
    y = jnp.dot(w2t, h, preferred_element_type=jnp.float32) + b2t    # (D, TB)
    return y  # Dropout = identity (inference)


def fold_ffn_params(gamma, beta, w1, b1, w2, b2):
    """One-time precompute: fold the LayerNorm affine into the first linear and
    transpose everything for the lane-dense (feature-on-sublane) layout."""
    w1f = w1 * gamma.reshape(-1, 1)          # (D, H): scale row d by gamma[d]
    b1f = beta @ w1 + b1                      # (1, H)
    return (w1f.T, b1f.T, w2.T, b2.T)


def ffn_branch_ref(x, gamma, beta, w1, b1, w2, b2):
    # Natural-layout pure-JAX reference with the original (unfolded) params.
    mean = jnp.mean(x, axis=-1, keepdims=True)
    var = jnp.mean(jnp.square(x - mean), axis=-1, keepdims=True)
    xn = (x - mean) * jax.lax.rsqrt(var + 1e-5)
    xn = xn * gamma + beta
    h = jax.nn.gelu(jnp.dot(xn, w1) + b1)
    return jnp.dot(h, w2) + b2


if __name__ == "__main__":
    # Small shapes consistent with DeformableConformer: emb_size=40, short
    # token sequence from the conv stem, expansion=4 in the FFN branch.
    batch, seq, emb = 2, 8, 40
    hidden = 4 * emb  # 160
    rows = batch * seq

    key = jax.random.PRNGKey(0)
    kx, kg, kb, kw1, kb1, kw2, kb2 = jax.random.split(key, 7)

    x = jax.random.normal(kx, (batch, seq, emb), jnp.float32)

    # Non-trivial LayerNorm affine so the wrapper-side fold is exercised.
    gamma = 1.0 + 0.1 * jax.random.normal(kg, (1, emb), jnp.float32)
    beta = 0.1 * jax.random.normal(kb, (1, emb), jnp.float32)
    bound1 = 1.0 / math.sqrt(emb)
    w1 = jax.random.uniform(kw1, (emb, hidden), jnp.float32, -bound1, bound1)
    b1 = jax.random.uniform(kb1, (1, hidden), jnp.float32, -bound1, bound1)
    bound2 = 1.0 / math.sqrt(hidden)
    w2 = jax.random.uniform(kw2, (hidden, emb), jnp.float32, -bound2, bound2)
    b2 = jax.random.uniform(kb2, (1, emb), jnp.float32, -bound2, bound2)

    params_t = fold_ffn_params(gamma, beta, w1, b1, w2, b2)

    # Advisory cost estimate so XLA schedules neighbours around this kernel.
    cost = pl.CostEstimate(
        flops=int(2 * rows * emb * hidden * 2),            # two GEMMs
        transcendentals=int(rows * hidden),                 # GELU tanh
        bytes_accessed=int(2 * rows * emb * 4 + sum(int(p.size) * 4 for p in params_t)),
    )

    # Run the fused ResidualAdd kernel (rows=16 -> single grid step, weights
    # VMEM-resident, no wrapper-side padding).
    y = residual_add(ffn_branch_t, x, params_t, cost_estimate=cost)
    jax.block_until_ready(y)

    # Pure-JAX reference: out = fn(x) + x (PyTorch semantics, unfolded params).
    x2d = x.reshape(-1, emb)
    y_ref = (ffn_branch_ref(x2d, gamma, beta, w1, b1, w2, b2) + x2d).reshape(x.shape)

    assert y.shape == x.shape
    max_err = float(jnp.max(jnp.abs(y - y_ref)))
    # Tolerance covers TPU f32-matmul pass-precision policy differences
    # (Mosaic MXU vs XLA) plus the var-formula / affine-fold reassociation;
    # real layout/fold bugs produce O(0.1+) errors and still fail.
    assert jnp.allclose(y, y_ref, atol=2e-2, rtol=2e-2), max_err

    print("KERNEL_OK")
</pallas_src>

<mosaic_0001>
module attributes {stable_mosaic.version = 11 : i64} {
  func.func @_residual_add_kernel(%arg0: i32, %arg1: memref<40x16xf32, #tpu.memory_space<vmem>>, %arg2: memref<160x40xf32, #tpu.memory_space<vmem>>, %arg3: memref<160x1xf32, #tpu.memory_space<vmem>>, %arg4: memref<40x160xf32, #tpu.memory_space<vmem>>, %arg5: memref<40x1xf32, #tpu.memory_space<vmem>>, %arg6: memref<40x16xf32, #tpu.memory_space<vmem>>) attributes {dimension_semantics = [#tpu.dimension_semantics<parallel>], iteration_bounds = array<i64: 1>, scalar_prefetch = 0 : i64, scratch_operands = 0 : i64, tpu.core_type = #tpu.core_type<tc>, window_params = [{transform_indices = @transform_0, window_bounds = array<i64: 40, 16>}, {pipeline_mode = #tpu.pipeline_mode<synchronous>, transform_indices = @transform_1, window_bounds = array<i64: 160, 40>}, {pipeline_mode = #tpu.pipeline_mode<synchronous>, transform_indices = @transform_2, window_bounds = array<i64: 160, 1>}, {pipeline_mode = #tpu.pipeline_mode<synchronous>, transform_indices = @transform_3, window_bounds = array<i64: 40, 160>}, {pipeline_mode = #tpu.pipeline_mode<synchronous>, transform_indices = @transform_4, window_bounds = array<i64: 40, 1>}, {transform_indices = @transform_5, window_bounds = array<i64: 40, 16>}]} {
    %c0 = arith.constant 0 : index
    %c0_0 = arith.constant 0 : index
    %0 = vector.load %arg2[%c0, %c0_0] : memref<160x40xf32, #tpu.memory_space<vmem>>, vector<160x40xf32>
    %c0_1 = arith.constant 0 : index
    %c0_2 = arith.constant 0 : index
    %1 = vector.load %arg3[%c0_1, %c0_2] : memref<160x1xf32, #tpu.memory_space<vmem>>, vector<160x1xf32>
    %c0_3 = arith.constant 0 : index
    %c0_4 = arith.constant 0 : index
    %2 = vector.load %arg4[%c0_3, %c0_4] : memref<40x160xf32, #tpu.memory_space<vmem>>, vector<40x160xf32>
    %c0_5 = arith.constant 0 : index
    %c0_6 = arith.constant 0 : index
    %3 = vector.load %arg5[%c0_5, %c0_6] : memref<40x1xf32, #tpu.memory_space<vmem>>, vector<40x1xf32>
    %c0_7 = arith.constant 0 : index
    %c0_8 = arith.constant 0 : index
    %4 = vector.load %arg1[%c0_7, %c0_8] : memref<40x16xf32, #tpu.memory_space<vmem>>, vector<40x16xf32>
    %cst = arith.constant dense<0.000000e+00> : vector<16xf32>
    %5 = vector.multi_reduction <add>, %4, %cst [0] : vector<40x16xf32> to vector<16xf32>
    %6 = vector.shape_cast %5 : vector<16xf32> to vector<1x16xf32>
    %7 = arith.mulf %4, %4 : vector<40x16xf32>
    %cst_9 = arith.constant dense<0.000000e+00> : vector<16xf32>
    %8 = vector.multi_reduction <add>, %7, %cst_9 [0] : vector<40x16xf32> to vector<16xf32>
    %9 = vector.shape_cast %8 : vector<16xf32> to vector<1x16xf32>
    %cst_10 = arith.constant 2.500000e-02 : f32
    %10 = vector.broadcast %cst_10 : f32 to vector<1x16xf32>
    %11 = arith.mulf %6, %10 : vector<1x16xf32>
    %cst_11 = arith.constant 2.500000e-02 : f32
    %12 = vector.broadcast %cst_11 : f32 to vector<1x16xf32>
    %13 = arith.mulf %9, %12 : vector<1x16xf32>
    %14 = arith.mulf %11, %11 : vector<1x16xf32>
    %15 = arith.subf %13, %14 : vector<1x16xf32>
    %16 = vector.broadcast %11 : vector<1x16xf32> to vector<40x16xf32>
    %17 = arith.subf %4, %16 : vector<40x16xf32>
    %cst_12 = arith.constant 9.99999974E-6 : f32
    %18 = vector.broadcast %cst_12 : f32 to vector<1x16xf32>
    %19 = arith.addf %15, %18 : vector<1x16xf32>
    %20 = math.rsqrt %19 : vector<1x16xf32>
    %21 = vector.broadcast %20 : vector<1x16xf32> to vector<40x16xf32>
    %22 = arith.mulf %17, %21 : vector<40x16xf32>
    %cst_13 = arith.constant dense<0.000000e+00> : vector<160x16xf32>
    %23 = tpu.matmul %0, %22, %cst_13 {dimension_numbers = #tpu.dot_dimension_numbers<[1], [0], [0], [1], [0, 0, 1, 1], [], []>} : vector<160x40xf32>, vector<40x16xf32>, vector<160x16xf32> -> vector<160x16xf32>
    %24 = vector.broadcast %1 : vector<160x1xf32> to vector<160x16xf32>
    %25 = arith.addf %23, %24 : vector<160x16xf32>
    %26 = arith.mulf %25, %25 : vector<160x16xf32>
    %27 = arith.mulf %25, %26 : vector<160x16xf32>
    %cst_14 = arith.constant 4.471500e-02 : f32
    %28 = vector.broadcast %cst_14 : f32 to vector<160x16xf32>
    %29 = arith.mulf %28, %27 : vector<160x16xf32>
    %30 = arith.addf %25, %29 : vector<160x16xf32>
    %cst_15 = arith.constant 0.797884583 : f32
    %31 = vector.broadcast %cst_15 : f32 to vector<160x16xf32>
    %32 = arith.mulf %31, %30 : vector<160x16xf32>
    %33 = math.tanh %32 : vector<160x16xf32>
    %cst_16 = arith.constant 1.000000e+00 : f32
    %34 = vector.broadcast %cst_16 : f32 to vector<160x16xf32>
    %35 = arith.addf %34, %33 : vector<160x16xf32>
    %cst_17 = arith.constant 5.000000e-01 : f32
    %36 = vector.broadcast %cst_17 : f32 to vector<160x16xf32>
    %37 = arith.mulf %36, %35 : vector<160x16xf32>
    %38 = arith.mulf %25, %37 : vector<160x16xf32>
    %cst_18 = arith.constant dense<0.000000e+00> : vector<40x16xf32>
    %39 = tpu.matmul %2, %38, %cst_18 {dimension_numbers = #tpu.dot_dimension_numbers<[1], [0], [0], [1], [0, 0, 1, 1], [], []>} : vector<40x160xf32>, vector<160x16xf32>, vector<40x16xf32> -> vector<40x16xf32>
    %40 = vector.broadcast %3 : vector<40x1xf32> to vector<40x16xf32>
    %41 = arith.addf %39, %40 : vector<40x16xf32>
    %c0_19 = arith.constant 0 : index
    %c0_20 = arith.constant 0 : index
    %42 = vector.load %arg1[%c0_19, %c0_20] : memref<40x16xf32, #tpu.memory_space<vmem>>, vector<40x16xf32>
    %43 = arith.addf %41, %42 : vector<40x16xf32>
    %c0_21 = arith.constant 0 : index
    %c0_22 = arith.constant 0 : index
    %44 = vector.load %arg6[%c0_21, %c0_22] : memref<40x16xf32, #tpu.memory_space<vmem>>, vector<40x16xf32>
    tpu.vector_store %arg6[%c0_21, %c0_22], %43 {strides = array<i32>} : memref<40x16xf32, #tpu.memory_space<vmem>>, vector<40x16xf32>,
    return
  }
  func.func @transform_0(%arg0: i32) -> (i32, i32) {
    %c0_i32 = arith.constant 0 : i32
    %c0_i32_0 = arith.constant 0 : i32
    return %c0_i32, %arg0 : i32, i32
  }
  func.func @transform_1(%arg0: i32) -> (i32, i32) {
    %c0_i32 = arith.constant 0 : i32
    %c0_i32_0 = arith.constant 0 : i32
    %c0_i32_1 = arith.constant 0 : i32
    return %c0_i32, %c0_i32_0 : i32, i32
  }
  func.func @transform_2(%arg0: i32) -> (i32, i32) {
    %c0_i32 = arith.constant 0 : i32
    %c0_i32_0 = arith.constant 0 : i32
    %c0_i32_1 = arith.constant 0 : i32
    return %c0_i32, %c0_i32_0 : i32, i32
  }
  func.func @transform_3(%arg0: i32) -> (i32, i32) {
    %c0_i32 = arith.constant 0 : i32
    %c0_i32_0 = arith.constant 0 : i32
    %c0_i32_1 = arith.constant 0 : i32
    return %c0_i32, %c0_i32_0 : i32, i32
  }
  func.func @transform_4(%arg0: i32) -> (i32, i32) {
    %c0_i32 = arith.constant 0 : i32
    %c0_i32_0 = arith.constant 0 : i32
    %c0_i32_1 = arith.constant 0 : i32
    return %c0_i32, %c0_i32_0 : i32, i32
  }
  func.func @transform_5(%arg0: i32) -> (i32, i32) {
    %c0_i32 = arith.constant 0 : i32
    %c0_i32_0 = arith.constant 0 : i32
    return %c0_i32, %arg0 : i32, i32
  }
}

</mosaic_0001>

<bundles_post_ra>
// kernel: tpu_custom_call.1
= control target key start
LH: loop header
LB: loop body
LE: loop exit
PB: predicated region body
PF: predicated region fallthrough
CT: control target
= control target key end

     0   :  { %vm80_vm0 = vcmask 130048   ;;  %vm232_vm1 = vcmask 326656   ;;  %v978_v3 = vmov 0   ;;  %vm663_vm2 = vcmask 261120   ;;  %s1460_s0 = inlined_call_operand.vmem [shape: f32[40,16], index: 0, kind: input, shape index: {}]   ;;  %s1461_s1 = inlined_call_operand.vmem [shape: f32[160,40], index: 1, kind: input, shape index: {}]   ;;  %s1462_s2 = inlined_call_operand.vmem [shape: f32[160,1], index: 2, kind: input, shape index: {}]   ;;  %s1463_s4 = inlined_call_operand.vmem [shape: f32[40,1], index: 4, kind: input, shape index: {}]   ;;  %s1464_s3 = inlined_call_operand.vmem [shape: f32[40,160], index: 3, kind: input, shape index: {}]   ;;  %s1465_s5 = inlined_call_operand.vmem [shape: f32[40,16], index: 5, kind: output, shape index: {}]  }
   0x1   :  { %v1013_v0 = vld [vmem:[%s1460_s0] sm:$0xff]  ;;  %v1018_v1 = vld [vmem:[%s1460_s0 + $0x8] sm:$0xff]  ;;  %v1023_v2 = vld [vmem:[%s1460_s0 + $0x10] sm:$0xff]  ;;  %933 = vset.pattern.permute.xlu0 %v978_v3  ;;  %934 = vset.pattern.permute.xlu1 %v978_v3 }
   0x2   :  { %v1028_v4 = vld [vmem:[%s1460_s0 + $0x18] sm:$0xff]  ;;  %v1033_v5 = vld [vmem:[%s1460_s0 + $0x20] sm:$0xff]  ;;  %v81_v6 = vsel %vm80_vm0, %v1013_v0, 0.0  ;;  %v82_v7 = vsel %vm80_vm0, %v1018_v1, 0.0  ;;  %v84_v8 = vsel %vm80_vm0, %v1023_v2, 0.0  ;;  %v96_v9 = vmul.f32 %v1013_v0, %v1013_v0  ;;  %v41_v30 = vld [vmem:[%s1462_s2 + $0x8] sm:$0xff] }
   0x3   :  { %v20_v10 = vld [vmem:[%s1461_s1] sm:$0xff]  ;;  %v83_v11 = vadd.f32 %v82_v7, %v81_v6  ;;  %v97_v12 = vmul.f32 %v1018_v1, %v1018_v1  ;;  %v86_v13 = vsel %vm80_vm0, %v1028_v4, 0.0  ;;  %v98_v14 = vmul.f32 %v1023_v2, %v1023_v2  ;;  %v42_v31 = vld [vmem:[%s1462_s2 + $0x10] sm:$0xff]  ;;  %v43_v34 = vld [vmem:[%s1462_s2 + $0x18] sm:$0xff] }
   0x4   :  { %843 = vmatprep.mubr.msk.f32.mxu0 %vm232_vm1, %v20_v10  ;;  %v99_v15 = vmul.f32 %v1028_v4, %v1028_v4  ;;  %v101_v16 = vsel %vm80_vm0, %v96_v9, 0.0  ;;  %v100_v18 = vmul.f32 %v1033_v5, %v1033_v5  ;;  %v88_v20 = vsel %vm80_vm0, %v1033_v5, 0.0  ;;  %v40_v26 = vld [vmem:[%s1462_s2] sm:$0xff]  ;;  %144 = vperm.xlu1 %934, %v42_v31   ;;  %v45_v40 = vld [vmem:[%s1462_s2 + $0x28] sm:$0xff]  ;;  %v46_v43 = vld [vmem:[%s1462_s2 + $0x30] sm:$0xff] }
   0x5   :  { %v85_v17 = vadd.f32 %v84_v8, %v83_v11  ;;  %v102_v19 = vsel %vm80_vm0, %v97_v12, 0.0  ;;  %v104_v22 = vsel %vm80_vm0, %v98_v14, 0.0  ;;  %134 = vperm.xlu0 %933, %v40_v26   ;;  %v44_v37 = vld [vmem:[%s1462_s2 + $0x20] sm:$0xff]  ;;  %v47_v46 = vld [vmem:[%s1462_s2 + $0x38] sm:$0xff]  ;;  %v49_v52 = vld [vmem:[%s1462_s2 + $0x48] sm:$0xff] }
   0x6   :  { %v103_v21 = vadd.f32 %v102_v19, %v101_v16  ;;  %v106_v24 = vsel %vm80_vm0, %v99_v15, 0.0  ;;  %v108_v28 = vsel %vm80_vm0, %v100_v18, 0.0  ;;  %v48_v49 = vld [vmem:[%s1462_s2 + $0x40] sm:$0xff]  ;;  %v50_v55 = vld [vmem:[%s1462_s2 + $0x50] sm:$0xff]  ;;  %v51_v57 = vld [vmem:[%s1462_s2 + $0x58] sm:$0xff] }
   0x7   :  { %v87_v23 = vadd.f32 %v86_v13, %v85_v17  ;;  %v52_v59 = vld [vmem:[%s1462_s2 + $0x60] sm:$0xff]  ;;  %v53_v60 = vld [vmem:[%s1462_s2 + $0x68] sm:$0xff]  ;;  %v54_v61 = vld [vmem:[%s1462_s2 + $0x70] sm:$0xff] }
   0x8   :  { %v105_v25 = vadd.f32 %v104_v22, %v103_v21  ;;  %149 = vperm.xlu1 %934, %v43_v34   ;;  %v55_v62 = vld [vmem:[%s1462_s2 + $0x78] sm:$0xff]  ;;  %v56_v63 = vld [vmem:[%s1462_s2 + $0x80] sm:$0xff]  ;;  %v57_v9 = vld [vmem:[%s1462_s2 + $0x88] sm:$0xff] }
   0x9   :  { %v89_v27 = vadd.f32 %v88_v20, %v87_v23  ;;  %139 = vperm.xlu0 %933, %v41_v30   ;;  %v58_v11 = vld [vmem:[%s1462_s2 + $0x90] sm:$0xff]  ;;  %v59_v16 = vld [vmem:[%s1462_s2 + $0x98] sm:$0xff]  ;;  %v70_v20 = vld [vmem:[%s1463_s4] sm:$0xff] }
   0xa   :  { %v107_v29 = vadd.f32 %v106_v24, %v105_v25  ;;  %v71_v21 = vld [vmem:[%s1463_s4 + $0x8] sm:$0xff]  ;;  %v72_v23 = vld [vmem:[%s1463_s4 + $0x10] sm:$0xff]  ;;  %v74_v25 = vld [vmem:[%s1463_s4 + $0x20] sm:$0xff] }
   0xb   :  { %v90_v32 = vrot.slane %v89_v27, 4  ;;  %v21_v24 = vld [vmem:[%s1461_s1 + $0x8] sm:$0xff]  ;;  %v22_v26 = vld [vmem:[%s1461_s1 + $0x10] sm:$0xff]  ;;  %v27_v31 = vld [vmem:[%s1461_s1 + $0x38] sm:$0xff] }
   0xc   :  { %v109_v33 = vadd.f32 %v108_v28, %v107_v29  ;;  %159 = vperm.xlu1 %934, %v45_v40   ;;  %v24_v28 = vld [vmem:[%s1461_s1 + $0x20] sm:$0xff]  ;;  %v25_v29 = vld [vmem:[%s1461_s1 + $0x28] sm:$0xff]  ;;  %v26_v30 = vld [vmem:[%s1461_s1 + $0x30] sm:$0xff] }
   0xd   :  { %v91_v35 = vadd.f32 %v90_v32, %v89_v27  ;;  %154 = vperm.xlu0 %933, %v44_v37   ;;  %v23_v27 = vld [vmem:[%s1461_s1 + $0x18] sm:$0xff]  ;;  %v28_v32 = vld [vmem:[%s1461_s1 + $0x40] sm:$0xff]  ;;  %v30_v34 = vld [vmem:[%s1461_s1 + $0x50] sm:$0xff] }
   0xe   :  { %v110_v36 = vrot.slane %v109_v33, 4  ;;  %v33_v37 = vld [vmem:[%s1461_s1 + $0x68] sm:$0xff]  ;;  %v36_v40 = vld [vmem:[%s1461_s1 + $0x80] sm:$0xff] }
   0xf   :  { %v92_v38 = vrot.slane %v91_v35, 2 }
  0x10   :  { %v111_v39 = vadd.f32 %v110_v36, %v109_v33  ;;  %169 = vperm.xlu1 %934, %v47_v46   ;;  %v29_v33 = vld [vmem:[%s1461_s1 + $0x48] sm:$0xff]  ;;  %v32_v36 = vld [vmem:[%s1461_s1 + $0x60] sm:$0xff]  ;;  %v63_v46 = vld [vmem:[%s1464_s3 + $0x18] sm:$0xff] }
  0x11   :  { %v93_v41 = vadd.f32 %v92_v38, %v91_v35  ;;  %164 = vperm.xlu0 %933, %v46_v43   ;;  %v31_v35 = vld [vmem:[%s1461_s1 + $0x58] sm:$0xff]  ;;  %v34_v38 = vld [vmem:[%s1461_s1 + $0x70] sm:$0xff]  ;;  %804 = vmatprep.mubr.msk.f32.mxu1 %vm663_vm2, %v63_v46 }
  0x12   :  { %v112_v42 = vrot.slane %v111_v39, 2  ;;  %v39_v43 = vld [vmem:[%s1461_s1 + $0x98] sm:$0xff] }
  0x13   :  { %v94_v44 = vrot.slane %v93_v41, 1 }
  0x14   :  { %v113_v45 = vadd.f32 %v112_v42, %v111_v39  ;;  %179 = vperm.xlu1 %934, %v49_v52   ;;  %v35_v39 = vld [vmem:[%s1461_s1 + $0x78] sm:$0xff]  ;;  %v38_v42 = vld [vmem:[%s1461_s1 + $0x90] sm:$0xff] }
  0x15   :  { %v95_v47 = vadd.f32 %v94_v44, %v93_v41  ;;  %174 = vperm.xlu0 %933, %v48_v49   ;;  %v37_v41 = vld [vmem:[%s1461_s1 + $0x88] sm:$0xff]  ;;  %v979_v44 = vmov 0.0|0.0  }
  0x16   :  { %v114_v48 = vrot.slane %v113_v45, 1  ;;  %911 = vmatprep.subr.bf16.mxu1 %v979_v44 }
  0x17   :  { %v116_v50 = vmul.f32 0.025, %v95_v47 }
  0x18   :  { %v115_v51 = vadd.f32 %v114_v48, %v113_v45  ;;  %189 = vperm.xlu1 %934, %v51_v57   ;;  %v61_v45 = vld [vmem:[%s1464_s3 + $0x8] sm:$0xff] }
  0x19   :  { %v118_v53 = vmul.f32 %v116_v50, %v116_v50  ;;  %184 = vperm.xlu0 %933, %v50_v55   ;;  %v120_v3 = vsub.f32 %v1013_v0, %v116_v50  ;;  %v121_v6 = vsub.f32 %v1018_v1, %v116_v50  ;;  %v122_v7 = vsub.f32 %v1023_v2, %v116_v50 }
  0x1a   :  { %v117_v54 = vmul.f32 0.025, %v115_v51  ;;  %v123_v8 = vsub.f32 %v1028_v4, %v116_v50  ;;  %v124_v19 = vsub.f32 %v1033_v5, %v116_v50  ;;  %v73_v5 = vld [vmem:[%s1463_s4 + $0x18] sm:$0xff] }
  0x1c   :  { %v119_v56 = vsub.f32 %v117_v54, %v118_v53  ;;  %199 = vperm.xlu1 %934, %v53_v60  }
  0x1d   :  { %194 = vperm.xlu0 %933, %v52_v59  }
  0x1e   :  { %v125_v58 = vadd.f32 1e-05, %v119_v56 }
  0x20   :  { %935 = vrsqrt.f32 %v125_v58  ;;  %209 = vperm.xlu1 %934, %v55_v62  }
  0x21   :  { %204 = vperm.xlu0 %933, %v54_v61  }
  0x24   :  { %219 = vperm.xlu1 %934, %v57_v9  }
  0x25   :  { %214 = vperm.xlu0 %933, %v56_v63  }
  0x28   :  { %229 = vperm.xlu1 %934, %v59_v16  }
  0x29   :  { %224 = vperm.xlu0 %933, %v58_v11  }
  0x2a   :  { %v936_v10 = vpop.eup %935 }
  0x2b   :  { %v127_v12 = vmul.f32 %v936_v10, %v120_v3  ;;  %v128_v13 = vmul.f32 %v936_v10, %v121_v6  ;;  %v129_v14 = vmul.f32 %v936_v10, %v122_v7  ;;  %v130_v15 = vmul.f32 %v936_v10, %v123_v8 }
  0x2c   :  { %v131_v22 = vmul.f32 %v936_v10, %v124_v19  ;;  %645 = vperm.xlu1 %934, %v71_v21  }
  0x2d   :  { %v873_v17 = vpack.c.bf16 %v128_v13, %v127_v12  ;;  %v877_v18 = vpack.c.bf16 %v130_v15, %v129_v14  ;;  %640 = vperm.xlu0 %933, %v70_v20  }
  0x2f   :  { %874 = vmatprep.subr.bf16.mxu0 %v873_v17 }
  0x30   :  { %876 = vmatpush3.bf16.msra.mxu0 %v873_v17  ;;  %655 = vperm.xlu1 %934, %v73_v5  }
  0x31   :  { %878 = vmatprep.subr.bf16.mxu0 %v877_v18  ;;  %650 = vperm.xlu0 %933, %v72_v23  }
  0x34   :  { %880 = vmatpush3.bf16.msra.mxu0 %v877_v18 }
  0x35   :  { %841 = vmatprep.subr.mxu0 %v131_v22  ;;  %660 = vperm.xlu0 %933, %v74_v25  }
  0x38   :  { %842 = vmatpush3.msra.mxu0 %v131_v22 }
  0x39   :  { %844 = vmatmul.mubr.msk.f32.vlgmr.msra.gmra.mrb[0].mxu0 %vm232_vm1, %v21_v24  ;;  %881 = vmatprep.subr.bf16.mxu0 %v979_v44 }
  0x3a   :  { %846 = vmatprep.mubr.msk.f32.mxu0 %vm232_vm1, %v22_v26 }
  0x3d   :  { %847 = vmatmul.mubr.msk.f32.gmra.mrb[2].mxu0 %vm232_vm1, %v23_v27 }
  0x3e   :  { %849 = vmatprep.mubr.msk.f32.mxu0 %vm232_vm1, %v24_v28 }
  0x41   :  { %850 = vmatmul.mubr.msk.f32.gmra.mrb[4].mxu0 %vm232_vm1, %v25_v29 }
  0x42   :  { %852 = vmatprep.mubr.msk.f32.mxu0 %vm232_vm1, %v26_v30 }
  0x45   :  { %853 = vmatmul.mubr.msk.f32.gmra.mrb[6].mxu0 %vm232_vm1, %v27_v31 }
  0x46   :  { %855 = vmatprep.mubr.msk.f32.mxu0 %vm232_vm1, %v28_v32 }
  0x49   :  { %856 = vmatmul.mubr.msk.f32.gmra.mrb[8].mxu0 %vm232_vm1, %v29_v33 }
  0x4a   :  { %858 = vmatprep.mubr.msk.f32.mxu0 %vm232_vm1, %v30_v34 }
  0x4d   :  { %859 = vmatmul.mubr.msk.f32.gmra.mrb[10].mxu0 %vm232_vm1, %v31_v35 }
  0x4e   :  { %861 = vmatprep.mubr.msk.f32.mxu0 %vm232_vm1, %v32_v36 }
  0x51   :  { %862 = vmatmul.mubr.msk.f32.gmra.mrb[12].mxu0 %vm232_vm1, %v33_v37 }
  0x52   :  { %864 = vmatprep.mubr.msk.f32.mxu0 %vm232_vm1, %v34_v38 }
  0x55   :  { %865 = vmatmul.mubr.msk.f32.gmra.mrb[14].mxu0 %vm232_vm1, %v35_v39 }
  0x56   :  { %867 = vmatprep.mubr.msk.f32.mxu0 %vm232_vm1, %v36_v40 }
  0x59   :  { %868 = vmatmul.mubr.msk.f32.gmra.mrb[16].mxu0 %vm232_vm1, %v37_v41 }
  0x5a   :  { %870 = vmatprep.mubr.msk.f32.mxu0 %vm232_vm1, %v38_v42 }
  0x5d   :  { %871 = vmatmul.mubr.msk.f32.gmra.mrb[18].mxu0 %vm232_vm1, %v39_v43 }
  0x5e   :  { %803 = vmatprep.mubr.msk.f32.mxu0 %vm663_vm2, %v61_v45 }
  0x83   :  { %v145_v47 = vpop.permute.xlu1 %144 }
  0x84   :  { %v135_v48 = vpop.permute.xlu0 %134 }
  0x87   :  { %v150_v49 = vpop.permute.xlu1 %149 }
  0x88   :  { %v140_v50 = vpop.permute.xlu0 %139 }
  0x8b   :  { %v160_v51 = vpop.permute.xlu1 %159 }
  0x8c   :  { %v155_v55 = vpop.permute.xlu0 %154 }
  0x8f   :  { %v170_v58 = vpop.permute.xlu1 %169 }
  0x90   :  { %v165_v9 = vpop.permute.xlu0 %164 }
  0x93   :  { %v180_v17 = vpop.permute.xlu1 %179 }
  0x94   :  { %v175_v31 = vpop.permute.xlu0 %174 }
  0x97   :  { %v190_v38 = vpop.permute.xlu1 %189 }
 0x10c   :  { %v845_v52 = vpop.f32.mrb[0].mxu0 }
 0x10d   :  { %v1230_v53 = vadd.f32 %v845_v52, %v140_v50  ;;  %v359_v54 = vpop.f32.mrb[1].mxu0 }
 0x10e   :  { %v1232_v56 = vadd.f32 %v359_v54, %v135_v48 }
 0x10f   :  { %v459_v57 = vmul.f32 %v1230_v53, %v1230_v53 }
 0x110   :  { %v458_v59 = vmul.f32 %v1232_v56, %v1232_v56  ;;  %v848_v60 = vpop.f32.mrb[2].mxu0 }
 0x111   :  { %v479_v61 = vmul.f32 %v459_v57, %v1230_v53  ;;  %v1239_v62 = vadd.f32 %v848_v60, %v150_v49  ;;  %v369_v63 = vpop.f32.mrb[3].mxu0 }
 0x112   :  { %v478_v3 = vmul.f32 %v458_v59, %v1232_v56  ;;  %v1242_v6 = vadd.f32 %v369_v63, %v145_v47 }
 0x113   :  { %v499_v7 = vmul.f32 0.044715, %v479_v61  ;;  %v461_v8 = vmul.f32 %v1239_v62, %v1239_v62 }
 0x114   :  { %v498_v10 = vmul.f32 0.044715, %v478_v3  ;;  %v460_v11 = vmul.f32 %v1242_v6, %v1242_v6  ;;  %v851_v12 = vpop.f32.mrb[4].mxu0 }
 0x115   :  { %v519_v13 = vadd.f32 %v499_v7, %v1230_v53  ;;  %v481_v14 = vmul.f32 %v461_v8, %v1239_v62  ;;  %v1250_v15 = vadd.f32 %v851_v12, %v160_v51  ;;  %v379_v16 = vpop.f32.mrb[5].mxu0  ;;  %v200_v8 = vpop.permute.xlu1 %199 }
 0x116   :  { %v518_v18 = vadd.f32 %v498_v10, %v1232_v56  ;;  %v480_v19 = vmul.f32 %v460_v11, %v1242_v6  ;;  %v1254_v20 = vadd.f32 %v379_v16, %v155_v55  ;;  %v185_v55 = vpop.permute.xlu0 %184 }
 0x117   :  { %v539_v21 = vmul.f32 0.7978846, %v519_v13  ;;  %v501_v22 = vmul.f32 0.044715, %v481_v14  ;;  %v463_v23 = vmul.f32 %v1250_v15, %v1250_v15 }
 0x118   :  { %v538_v5 = vmul.f32 0.7978846, %v518_v18  ;;  %v500_v24 = vmul.f32 0.044715, %v480_v19  ;;  %v462_v25 = vmul.f32 %v1254_v20, %v1254_v20  ;;  %v854_v26 = vpop.f32.mrb[6].mxu0 }
 0x119   :  { %937 = vtanh.f32 %v539_v21  ;;  %v521_v27 = vadd.f32 %v501_v22, %v1239_v62  ;;  %v483_v28 = vmul.f32 %v463_v23, %v1250_v15  ;;  %v1262_v29 = vadd.f32 %v854_v26, %v170_v58  ;;  %v389_v30 = vpop.f32.mrb[7].mxu0 }
 0x11a   :  { %939 = vtanh.f32 %v538_v5  ;;  %v520_v32 = vadd.f32 %v500_v24, %v1242_v6  ;;  %v482_v33 = vmul.f32 %v462_v25, %v1254_v20  ;;  %v1266_v34 = vadd.f32 %v389_v30, %v165_v9 }
 0x11b   :  { %v541_v35 = vmul.f32 0.7978846, %v521_v27  ;;  %v503_v36 = vmul.f32 0.044715, %v483_v28  ;;  %v465_v37 = vmul.f32 %v1262_v29, %v1262_v29  ;;  %v195_v27 = vpop.permute.xlu0 %194 }
 0x11c   :  { %v540_v39 = vmul.f32 0.7978846, %v520_v32  ;;  %v502_v40 = vmul.f32 0.044715, %v482_v33  ;;  %v464_v41 = vmul.f32 %v1266_v34, %v1266_v34  ;;  %v857_v42 = vpop.f32.mrb[8].mxu0 }
 0x11d   :  { %941 = vtanh.f32 %v541_v35  ;;  %v523_v43 = vadd.f32 %v503_v36, %v1250_v15  ;;  %v485_v45 = vmul.f32 %v465_v37, %v1262_v29  ;;  %v1274_v46 = vadd.f32 %v857_v42, %v180_v17  ;;  %v399_v47 = vpop.f32.mrb[9].mxu0 }
 0x11e   :  { %943 = vtanh.f32 %v540_v39  ;;  %v522_v48 = vadd.f32 %v502_v40, %v1254_v20  ;;  %v484_v49 = vmul.f32 %v464_v41, %v1266_v34  ;;  %v1278_v50 = vadd.f32 %v399_v47, %v175_v31  ;;  %v210_v39 = vpop.permute.xlu1 %209 }
 0x11f   :  { %v543_v51 = vmul.f32 0.7978846, %v523_v43  ;;  %v505_v52 = vmul.f32 0.044715, %v485_v45  ;;  %v467_v54 = vmul.f32 %v1274_v46, %v1274_v46 }
 0x120   :  { %v542_v57 = vmul.f32 0.7978846, %v522_v48  ;;  %v504_v58 = vmul.f32 0.044715, %v484_v49  ;;  %v466_v59 = vmul.f32 %v1278_v50, %v1278_v50  ;;  %v860_v60 = vpop.f32.mrb[10].mxu0 }
 0x121   :  { %945 = vtanh.f32 %v543_v51  ;;  %v525_v61 = vadd.f32 %v505_v52, %v1262_v29  ;;  %v487_v63 = vmul.f32 %v467_v54, %v1274_v46  ;;  %v1286_v3 = vadd.f32 %v860_v60, %v190_v38  ;;  %v409_v7 = vpop.f32.mrb[11].mxu0 }
 0x122   :  { %947 = vtanh.f32 %v542_v57  ;;  %v524_v9 = vadd.f32 %v504_v58, %v1266_v34  ;;  %v486_v10 = vmul.f32 %v466_v59, %v1278_v50  ;;  %v1290_v11 = vadd.f32 %v409_v7, %v185_v55 }
 0x123   :  { %v938_v12 = vpop.eup %937  ;;  %v545_v13 = vmul.f32 0.7978846, %v525_v61  ;;  %v507_v14 = vmul.f32 0.044715, %v487_v63  ;;  %v469_v16 = vmul.f32 %v1286_v3, %v1286_v3  ;;  %v205_v61 = vpop.permute.xlu0 %204 }
 0x124   :  { %v940_v17 = vpop.eup %939  ;;  %v579_v18 = vadd.f32 1.0, %v938_v12  ;;  %v544_v19 = vmul.f32 0.7978846, %v524_v9  ;;  %v506_v21 = vmul.f32 0.044715, %v486_v10  ;;  %v468_v22 = vmul.f32 %v1290_v11, %v1290_v11  ;;  %v863_v23 = vpop.f32.mrb[12].mxu0 }
 0x125   :  { %v578_v5 = vadd.f32 1.0, %v940_v17  ;;  %949 = vtanh.f32 %v545_v13  ;;  %v527_v24 = vadd.f32 %v507_v14, %v1274_v46  ;;  %v489_v25 = vmul.f32 %v469_v16, %v1286_v3  ;;  %v419_v26 = vpop.f32.mrb[13].mxu0  ;;  %v220_v17 = vpop.permute.xlu1 %219 }
 0x126   :  { %v599_v28 = vmul.f32 0.5, %v579_v18  ;;  %951 = vtanh.f32 %v544_v19  ;;  %v526_v30 = vadd.f32 %v506_v21, %v1278_v50  ;;  %v488_v31 = vmul.f32 %v468_v22, %v1290_v11 }
 0x127   :  { %v942_v32 = vpop.eup %941  ;;  %v598_v33 = vmul.f32 0.5, %v578_v5  ;;  %v547_v35 = vmul.f32 0.7978846, %v527_v24  ;;  %v509_v36 = vmul.f32 0.044715, %v489_v25  ;;  %v1300_v37 = vadd.f32 %v863_v23, %v200_v8 }
 0x128   :  { %v944_v38 = vpop.eup %943  ;;  %v1303_v40 = vmul.f32 %v599_v28, %v1230_v53  ;;  %v581_v41 = vadd.f32 1.0, %v942_v32  ;;  %v546_v42 = vmul.f32 0.7978846, %v526_v30  ;;  %v508_v43 = vmul.f32 0.044715, %v488_v31  ;;  %v866_v45 = vpop.f32.mrb[14].mxu0 }
 0x129   :  { %v1306_v47 = vmul.f32 %v598_v33, %v1232_v56  ;;  %v580_v48 = vadd.f32 1.0, %v944_v38  ;;  %953 = vtanh.f32 %v547_v35  ;;  %v529_v49 = vadd.f32 %v509_v36, %v1286_v3  ;;  %v429_v51 = vpop.f32.mrb[15].mxu0  ;;  %v215_v38 = vpop.permute.xlu0 %214 }
 0x12a   :  { %v601_v52 = vmul.f32 0.5, %v581_v41  ;;  %955 = vtanh.f32 %v546_v42  ;;  %v528_v54 = vadd.f32 %v508_v43, %v1290_v11  ;;  %v471_v53 = vmul.f32 %v1300_v37, %v1300_v37 }
 0x12b   :  { %v946_v55 = vpop.eup %945  ;;  %v600_v57 = vmul.f32 0.5, %v580_v48  ;;  %v549_v58 = vmul.f32 0.7978846, %v529_v49  ;;  %v1312_v59 = vadd.f32 %v419_v26, %v195_v27  ;;  %v1314_v60 = vadd.f32 %v866_v45, %v210_v39 }
 0x12c   :  { %v948_v56 = vpop.eup %947  ;;  %v1317_v63 = vmul.f32 %v601_v52, %v1239_v62  ;;  %v583_v7 = vadd.f32 1.0, %v946_v55  ;;  %v548_v8 = vmul.f32 0.7978846, %v528_v54  ;;  %v491_v9 = vmul.f32 %v471_v53, %v1300_v37  ;;  %v869_v10 = vpop.f32.mrb[16].mxu0 }
 0x12d   :  { %v1321_v12 = vmul.f32 %v600_v57, %v1242_v6  ;;  %v582_v13 = vadd.f32 1.0, %v948_v56  ;;  %957 = vtanh.f32 %v549_v58  ;;  %v470_v14 = vmul.f32 %v1312_v59, %v1312_v59  ;;  %v439_v16 = vpop.f32.mrb[17].mxu0 }
 0x12e   :  { %v603_v18 = vmul.f32 0.5, %v583_v7  ;;  %959 = vtanh.f32 %v548_v8  ;;  %v511_v19 = vmul.f32 0.044715, %v491_v9  ;;  %v473_v62 = vmul.f32 %v1314_v60, %v1314_v60 }
 0x12f   :  { %v950_v21 = vpop.eup %949  ;;  %v602_v22 = vmul.f32 0.5, %v582_v13  ;;  %v490_v23 = vmul.f32 %v470_v14, %v1312_v59  ;;  %v1328_v5 = vadd.f32 %v429_v51, %v205_v61  ;;  %v1330_v6 = vadd.f32 %v869_v10, %v220_v17 }
 0x130   :  { %v952_v24 = vpop.eup %951  ;;  %v1333_v25 = vmul.f32 %v603_v18, %v1250_v15  ;;  %v585_v26 = vadd.f32 1.0, %v950_v21  ;;  %v531_v27 = vadd.f32 %v511_v19, %v1300_v37  ;;  %v493_v28 = vmul.f32 %v473_v62, %v1314_v60  ;;  %v872_v30 = vpop.f32.mrb[18].mxu0 }
 0x131   :  { %v1338_v31 = vmul.f32 %v602_v22, %v1254_v20  ;;  %v584_v32 = vadd.f32 1.0, %v952_v24  ;;  %v510_v33 = vmul.f32 0.044715, %v490_v23  ;;  %v472_v35 = vmul.f32 %v1328_v5, %v1328_v5  ;;  %v449_v36 = vpop.f32.mrb[19].mxu0  ;;  %v225_v19 = vpop.permute.xlu0 %224 }
 0x132   :  { %v605_v39 = vmul.f32 0.5, %v585_v26  ;;  %v551_v41 = vmul.f32 0.7978846, %v531_v27  ;;  %v513_v15 = vmul.f32 0.044715, %v493_v28  ;;  %v475_v42 = vmul.f32 %v1330_v6, %v1330_v6  ;;  %v230_v62 = vpop.permute.xlu1 %229 }
 0x133   :  { %v954_v43 = vpop.eup %953  ;;  %v604_v45 = vmul.f32 0.5, %v584_v32  ;;  %v530_v48 = vadd.f32 %v510_v33, %v1312_v59  ;;  %v492_v20 = vmul.f32 %v472_v35, %v1328_v5  ;;  %v1346_v49 = vadd.f32 %v439_v16, %v215_v38 }
 0x134   :  { %v956_v51 = vpop.eup %955  ;;  %v625_v52 = vmul.f32 %v605_v39, %v1262_v29  ;;  %v587_v54 = vadd.f32 1.0, %v954_v43  ;;  %961 = vtanh.f32 %v551_v41  ;;  %v533_v53 = vadd.f32 %v513_v15, %v1314_v60 }
 0x135   :  { %v624_v55 = vmul.f32 %v604_v45, %v1266_v34  ;;  %v586_v57 = vadd.f32 1.0, %v956_v51  ;;  %v550_v58 = vmul.f32 0.7978846, %v530_v48  ;;  %v512_v56 = vmul.f32 0.044715, %v492_v20 }
 0x136   :  { %v607_v61 = vmul.f32 0.5, %v587_v54  ;;  %v553_v7 = vmul.f32 0.7978846, %v533_v53  ;;  %v495_v8 = vmul.f32 %v475_v42, %v1330_v6  ;;  %v474_v9 = vmul.f32 %v1346_v49, %v1346_v49 }
 0x137   :  { %v958_v10 = vpop.eup %957  ;;  %v606_v13 = vmul.f32 0.5, %v586_v57  ;;  %963 = vtanh.f32 %v550_v58  ;;  %v532_v29 = vadd.f32 %v512_v56, %v1328_v5  ;;  %v882_v14 = vpack.c.bf16 %v1303_v40, %v1306_v47 }
 0x138   :  { %v960_v16 = vpop.eup %959  ;;  %v627_v34 = vmul.f32 %v607_v61, %v1274_v46  ;;  %v589_v17 = vadd.f32 1.0, %v958_v10  ;;  %965 = vtanh.f32 %v553_v7  ;;  %v515_v18 = vmul.f32 0.044715, %v495_v8 }
 0x139   :  { %v626_v21 = vmul.f32 %v606_v13, %v1278_v50  ;;  %v588_v22 = vadd.f32 1.0, %v960_v16  ;;  %v552_v23 = vmul.f32 0.7978846, %v532_v29  ;;  %v494_v24 = vmul.f32 %v474_v9, %v1346_v49  ;;  %883 = vmatpush1.bf16.msra.mxu0 %v882_v14  ;;  %921 = vmatpush1.bf16.msra.mxu1 %v882_v14 }
 0x13a   :  { %v609_v26 = vmul.f32 0.5, %v589_v17  ;;  %v535_v27 = vadd.f32 %v515_v18, %v1330_v6  ;;  %v1361_v40 = vadd.f32 %v872_v30, %v230_v62  ;;  %884 = vmatprep.subr.bf16.mxu0 %v979_v44  ;;  %912 = vmatprep.subr.bf16.mxu1 %v979_v44  ;;  %v1365_v46 = vadd.f32 %v449_v36, %v225_v19 }
 0x13b   :  { %v608_v47 = vmul.f32 0.5, %v588_v22  ;;  %967 = vtanh.f32 %v552_v23  ;;  %v514_v50 = vmul.f32 0.044715, %v494_v24  ;;  %v885_v28 = vpack.c.bf16 %v1317_v63, %v1321_v12 }
 0x13c   :  { %v629_v32 = vmul.f32 %v609_v26, %v1286_v3  ;;  %v555_v33 = vmul.f32 0.7978846, %v535_v27  ;;  %v477_v35 = vmul.f32 %v1361_v40, %v1361_v40  ;;  %v476_v30 = vmul.f32 %v1365_v46, %v1365_v46 }
 0x13d   :  { %v628_v38 = vmul.f32 %v608_v47, %v1290_v11  ;;  %v534_v36 = vadd.f32 %v514_v50, %v1346_v49  ;;  %886 = vmatpush1.bf16.msra.mxu0 %v885_v28  ;;  %922 = vmatpush1.bf16.msra.mxu1 %v885_v28  ;;  %v888_v39 = vpack.c.bf16 %v1333_v25, %v1338_v31  ;;  %v65_v50 = vld [vmem:[%s1464_s3 + $0x28] sm:$0xff]  ;;  %v67_v28 = vld [vmem:[%s1464_s3 + $0x38] sm:$0xff] }
 0x13e   :  { %v962_v41 = vpop.eup %961  ;;  %969 = vtanh.f32 %v555_v33  ;;  %v497_v3 = vmul.f32 %v477_v35, %v1361_v40  ;;  %v496_v63 = vmul.f32 %v476_v30, %v1365_v46  ;;  %887 = vmatprep.subr.bf16.mxu0 %v979_v44  ;;  %913 = vmatprep.subr.bf16.mxu1 %v979_v44  ;;  %v891_v12 = vpack.c.bf16 %v625_v52, %v624_v55  ;;  %v69_v33 = vld [vmem:[%s1464_s3 + $0x48] sm:$0xff]  ;;  %v68_v35 = vld [vmem:[%s1464_s3 + $0x40] sm:$0xff]  ;;  %v641_v30 = vpop.permute.xlu0 %640 }
 0x13f   :  { %v591_v15 = vadd.f32 1.0, %v962_v41  ;;  %v554_v11 = vmul.f32 0.7978846, %v534_v36  ;;  %v894_v42 = vpack.c.bf16 %v627_v34, %v626_v21  ;;  %v897_v43 = vpack.c.bf16 %v629_v32, %v628_v38  ;;  %v66_v32 = vld [vmem:[%s1464_s3 + $0x30] sm:$0xff]  ;;  %v646_v38 = vpop.permute.xlu1 %645 }
 0x140   :  { %v517_v45 = vmul.f32 0.044715, %v497_v3  ;;  %v516_v48 = vmul.f32 0.044715, %v496_v63 }
 0x141   :  { %v964_v20 = vpop.eup %963  ;;  %v611_v51 = vmul.f32 0.5, %v591_v15  ;;  %971 = vtanh.f32 %v554_v11  ;;  %889 = vmatpush1.bf16.msra.mxu0 %v888_v39  ;;  %923 = vmatpush1.bf16.msra.mxu1 %v888_v39 }
 0x142   :  { %v966_v25 = vpop.eup %965  ;;  %v590_v31 = vadd.f32 1.0, %v964_v20  ;;  %v537_v54 = vadd.f32 %v517_v45, %v1361_v40  ;;  %v536_v53 = vadd.f32 %v516_v48, %v1365_v46  ;;  %890 = vmatprep.subr.bf16.mxu0 %v979_v44  ;;  %914 = vmatprep.subr.bf16.mxu1 %v979_v44 }
 0x143   :  { %v593_v52 = vadd.f32 1.0, %v966_v25  ;;  %v631_v55 = vmul.f32 %v611_v51, %v1300_v37  ;;  %v656_v51 = vpop.permute.xlu1 %655 }
 0x144   :  { %v610_v57 = vmul.f32 0.5, %v590_v31  ;;  %v557_v58 = vmul.f32 0.7978846, %v537_v54  ;;  %v556_v56 = vmul.f32 0.7978846, %v536_v53 }
 0x145   :  { %v968_v61 = vpop.eup %967  ;;  %v613_v7 = vmul.f32 0.5, %v593_v52  ;;  %892 = vmatpush1.bf16.msra.mxu0 %v891_v12  ;;  %924 = vmatpush1.bf16.msra.mxu1 %v891_v12 }
 0x146   :  { %v630_v8 = vmul.f32 %v610_v57, %v1312_v59  ;;  %v592_v9 = vadd.f32 1.0, %v968_v61  ;;  %973 = vtanh.f32 %v557_v58  ;;  %893 = vmatprep.subr.bf16.mxu0 %v979_v44  ;;  %915 = vmatprep.subr.bf16.mxu1 %v979_v44 }
 0x147   :  { %975 = vtanh.f32 %v556_v56  ;;  %v633_v13 = vmul.f32 %v613_v7, %v1314_v60 }
 0x148   :  { %v970_v10 = vpop.eup %969  ;;  %v612_v37 = vmul.f32 0.5, %v592_v9  ;;  %v900_v29 = vpack.c.bf16 %v631_v55, %v630_v8  ;;  %v977_v55 = vld [vmem:[%s1460_s0 + $0x20] sm:$0xff] }
 0x149   :  { %v595_v14 = vadd.f32 1.0, %v970_v10  ;;  %895 = vmatpush1.bf16.msra.mxu0 %v894_v42  ;;  %925 = vmatpush1.bf16.msra.mxu1 %v894_v42  ;;  %v651_v42 = vpop.permute.xlu0 %650 }
 0x14a   :  { %v632_v16 = vmul.f32 %v612_v37, %v1328_v5  ;;  %896 = vmatprep.subr.bf16.mxu0 %v979_v44  ;;  %916 = vmatprep.subr.bf16.mxu1 %v979_v44 }
 0x14b   :  { %v972_v59 = vpop.eup %971  ;;  %v615_v34 = vmul.f32 0.5, %v595_v14 }
 0x14c   :  { %v594_v17 = vadd.f32 1.0, %v972_v59  ;;  %v903_v18 = vpack.c.bf16 %v633_v13, %v632_v16 }
 0x14d   :  { %898 = vmatpush1.bf16.msra.mxu0 %v897_v43  ;;  %926 = vmatpush1.bf16.msra.mxu1 %v897_v43  ;;  %v635_v19 = vmul.f32 %v615_v34, %v1330_v6  ;;  %v661_v54 = vpop.permute.xlu0 %660 }
 0x14e   :  { %v614_v60 = vmul.f32 0.5, %v594_v17  ;;  %899 = vmatprep.subr.bf16.mxu0 %v979_v44  ;;  %917 = vmatprep.subr.bf16.mxu1 %v979_v44 }
 0x150   :  { %v974_v62 = vpop.eup %973  ;;  %v634_v5 = vmul.f32 %v614_v60, %v1346_v49 }
 0x151   :  { %v976_v21 = vpop.eup %975  ;;  %v597_v22 = vadd.f32 1.0, %v974_v62  ;;  %901 = vmatpush1.bf16.msra.mxu0 %v900_v29  ;;  %927 = vmatpush1.bf16.msra.mxu1 %v900_v29 }
 0x152   :  { %v596_v23 = vadd.f32 1.0, %v976_v21  ;;  %902 = vmatprep.subr.bf16.mxu0 %v979_v44  ;;  %918 = vmatprep.subr.bf16.mxu1 %v979_v44  ;;  %v906_v24 = vpack.c.bf16 %v635_v19, %v634_v5 }
 0x153   :  { %v617_v26 = vmul.f32 0.5, %v597_v22 }
 0x154   :  { %v616_v6 = vmul.f32 0.5, %v596_v23 }
 0x155   :  { %v637_v27 = vmul.f32 %v617_v26, %v1361_v40  ;;  %904 = vmatpush1.bf16.msra.mxu0 %v903_v18  ;;  %928 = vmatpush1.bf16.msra.mxu1 %v903_v18  ;;  %v60_v40 = vld [vmem:[%s1464_s3] sm:$0xff] }
 0x156   :  { %v636_v47 = vmul.f32 %v616_v6, %v1365_v46  ;;  %905 = vmatprep.subr.bf16.mxu0 %v979_v44  ;;  %919 = vmatprep.subr.bf16.mxu1 %v979_v44  ;;  %v62_v46 = vld [vmem:[%s1464_s3 + $0x10] sm:$0xff] }
 0x158   :  { %v909_v49 = vpack.c.bf16 %v637_v27, %v636_v47 }
 0x159   :  { %907 = vmatpush1.bf16.msra.mxu0 %v906_v24  ;;  %929 = vmatpush1.bf16.msra.mxu1 %v906_v24 }
 0x15a   :  { %908 = vmatprep.subr.bf16.mxu0 %v979_v44  ;;  %920 = vmatprep.subr.bf16.mxu1 %v979_v44  ;;  %v64_v44 = vld [vmem:[%s1464_s3 + $0x20] sm:$0xff] }
 0x15d   :  { %910 = vmatpush1.bf16.msra.mxu0 %v909_v49  ;;  %930 = vmatpush1.bf16.msra.mxu1 %v909_v49 }
 0x160   :  { %744 = vmatmul.mubr.f32.vlgmr.msra.gmra.mrb[20].mxu0 %v60_v40  ;;  %749 = vmatmul.mubr.f32.vlgmr.msra.gmra.mrb[0].mxu1 %v62_v46 }
 0x161   :  { %805 = vmatprep.mubr.msk.f32.mxu1 %vm663_vm2, %v65_v50 }
 0x164   :  { %754 = vmatmul.mubr.f32.gmra.mrb[2].mxu1 %v64_v44 }
 0x165   :  { %806 = vmatprep.mubr.msk.f32.mxu1 %vm663_vm2, %v67_v28 }
 0x168   :  { %759 = vmatmul.mubr.f32.gmra.mrb[4].mxu1 %v66_v32 }
 0x169   :  { %807 = vmatprep.mubr.msk.f32.mxu1 %vm663_vm2, %v69_v33 }
 0x16c   :  { %764 = vmatmul.mubr.f32.gmra.mrb[6].mxu1 %v68_v35 }
 0x233   :  { %v745_v36 = vpop.f32.mrb[20].mxu0  ;;  %v750_v39 = vpop.f32.mrb[0].mxu1 }
 0x234   :  { %v746_v41 = vadd.f32 %v745_v36, %v641_v30  ;;  %v751_v3 = vadd.f32 %v750_v39, %v646_v38  ;;  %v752_v63 = vpop.f32.mrb[1].mxu1  ;;  %v747_v12 = vpop.f32.mrb[21].mxu0 }
 0x236   :  { %v769_v15 = vadd.f32 %v746_v41, %v1013_v0  ;;  %v770_v11 = vadd.f32 %v751_v3, %v1018_v1 }
 0x237   :  { %v755_v43 = vpop.f32.mrb[2].mxu1 }
 0x238   :  { %774 = vst.msk [vmem:[%s1465_s5] sm:$0xff] %vm80_vm0, %v769_v15  ;;  %775 = vst.msk [vmem:[%s1465_s5 + $0x8] sm:$0xff] %vm80_vm0, %v770_v11  ;;  %v756_v45 = vadd.f32 %v755_v43, %v651_v42  ;;  %v757_v48 = vpop.f32.mrb[3].mxu1 }
 0x23a   :  { %v771_v20 = vadd.f32 %v756_v45, %v1023_v2 }
 0x23b   :  { %v760_v0 = vpop.f32.mrb[4].mxu1 }
 0x23c   :  { %776 = vst.msk [vmem:[%s1465_s5 + $0x10] sm:$0xff] %vm80_vm0, %v771_v20  ;;  %v761_v1 = vadd.f32 %v760_v0, %v656_v51  ;;  %v762_v25 = vpop.f32.mrb[5].mxu1 }
 0x23e   :  { %v772_v31 = vadd.f32 %v761_v1, %v1028_v4 }
 0x23f   :  { %v765_v53 = vpop.f32.mrb[6].mxu1 }
 0x240   :  { %777 = vst.msk [vmem:[%s1465_s5 + $0x18] sm:$0xff] %vm80_vm0, %v772_v31  ;;  %v766_v52 = vadd.f32 %v765_v53, %v661_v54  ;;  %v767_v2 = vpop.f32.mrb[7].mxu1 }
 0x242   :  { %v773_v57 = vadd.f32 %v977_v55, %v766_v52 }
 0x244   :  { %778 = vst.msk [vmem:[%s1465_s5 + $0x20] sm:$0xff] %vm80_vm0, %v773_v57 }

</bundles_post_ra>
